<compile_context>
chip_gen: v5e
topology: v5e:2x2
jax: 0.10.0
libtpu: 0.0.40
codegen_flags: <defaults>
</compile_context>

<pallas_src>
import functools

import jax
import jax.numpy as jnp
from jax import lax
from jax.experimental import pallas as pl
from jax.experimental.pallas import tpu as pltpu

NEG_SLOPE = 0.2
NEG_INF = -1e30


def _vmem_limit_bytes():
    # Per-generation scoped-VMEM cap: ~60% of physical VMEM (64 MiB on v7x, 128 MiB v5e/v6e),
    # capped at 96 MiB. Falls back to a conservative 64 MiB assumption if the query fails.
    try:
        cap = int(pltpu.get_tpu_info().vmem_capacity_bytes)
    except Exception:
        cap = 64 * 1024 * 1024
    return int(min(cap * 6 // 10, 96 * 1024 * 1024))


_VMEM_LIMIT = _vmem_limit_bytes()


def _choose_tile(n, max_tile):
    t = max_tile
    while t >= 8:
        if n % t == 0:
            return t
        t //= 2
    return n  # full-extent block (always a legal block shape)


# ---------------------------------------------------------------------------
# Kernel 1: per-etype projection + per-head attention scores computed directly
# from feat with pre-folded score weights (WL = W@AL, WR = W@AR).
#   z   = feat @ W[e]        (TM, H*D)  bf16 out
#   el  = feat @ WL[e]  -> emitted transposed as (H, TM) via A @ B^T on the MXU
#   er  = feat @ WR[e]       (TM, H)
# ---------------------------------------------------------------------------
def proj_kernel(feat_ref, w_ref, wlt_ref, wr_ref, z_ref, elt_ref, er_ref):
    feat = feat_ref[...]                                                   # (TM, F) bf16
    z = jnp.dot(feat, w_ref[0], preferred_element_type=jnp.float32)       # (TM, HD) f32
    # src scores, pre-transposed: (H, F) contracted with (TM, F) over F -> (H, TM)
    elt = lax.dot_general(wlt_ref[0], feat, (((1,), (1,)), ((), ())),
                          preferred_element_type=jnp.float32)              # (H, TM)
    er = jnp.dot(feat, wr_ref[0], preferred_element_type=jnp.float32)      # (TM, H)
    z_ref[0] = z.astype(z_ref.dtype)
    elt_ref[0] = elt
    er_ref[0] = er


def project_all_relations(feat_bf16, w_bf16, wlt_bf16, wr_bf16, *, tm):
    e_types, f_in, hd = w_bf16.shape
    n = feat_bf16.shape[0]
    h = wr_bf16.shape[-1]
    return pl.pallas_call(
        proj_kernel,
        out_shape=(
            jax.ShapeDtypeStruct((e_types, n, hd), jnp.bfloat16),   # z (projected src features)
            jax.ShapeDtypeStruct((e_types, h, n), jnp.float32),     # el_t (src scores, transposed)
            jax.ShapeDtypeStruct((e_types, n, h), jnp.float32),     # er (dst scores)
        ),
        grid=(n // tm, e_types),
        in_specs=[
            pl.BlockSpec((tm, f_in), lambda i, e: (i, 0)),          # feat tile (constant over e)
            pl.BlockSpec((1, f_in, hd), lambda i, e: (e, 0, 0)),    # W[e]
            pl.BlockSpec((1, h, f_in), lambda i, e: (e, 0, 0)),     # WL[e]^T
            pl.BlockSpec((1, f_in, h), lambda i, e: (e, 0, 0)),     # WR[e]
        ],
        out_specs=(
            pl.BlockSpec((1, tm, hd), lambda i, e: (e, i, 0)),
            pl.BlockSpec((1, h, tm), lambda i, e: (e, 0, i)),       # lane-dense transposed store
            pl.BlockSpec((1, tm, h), lambda i, e: (e, i, 0)),
        ),
        compiler_params=pltpu.CompilerParams(
            dimension_semantics=("parallel", "parallel"),
            vmem_limit_bytes=_VMEM_LIMIT),
    )(feat_bf16, w_bf16, wlt_bf16, wr_bf16)


# ---------------------------------------------------------------------------
# Kernel 2: masked edge-softmax + attention-weighted aggregation, fused with
# HeteroGraphConv 'sum' over edge types, bias add and (optional) ReLU.
# Grid: (dst row tiles [parallel], edge types [arbitrary, accumulated in VMEM scratch]).
# z and el_t are resident across the whole grid (constant index_map); only the
# int8 adjacency tile and the small er tile stream per step.
# ---------------------------------------------------------------------------
def attn_agg_kernel(adj_ref, z_ref, elt_ref, er_ref, b_ref, o_ref, acc_ref, *,
                    n_heads, head_dim, apply_relu):
    e_idx = pl.program_id(1)
    last_e = pl.num_programs(1) - 1

    @pl.when(e_idx == 0)
    def _():
        acc_ref[...] = jnp.zeros_like(acc_ref)

    edge = adj_ref[0] != 0                 # (TM, NS) mask from int8 adjacency
    er = er_ref[0]                         # (TM, H) f32 dst scores for this tile
    el_t = elt_ref[e_idx]                  # (H, NS) f32 src scores (resident, sliced by etype)
    z = z_ref[e_idx]                       # (NS, HD) bf16 projected src features (resident)

    outs = []
    for h in range(n_heads):               # static unroll, H is small
        s = er[:, h:h + 1] + el_t[h:h + 1, :]             # (TM, NS): er[dst] + el[src]
        s = jnp.where(s > 0, s, NEG_SLOPE * s)            # leaky_relu(0.2)
        s = jnp.where(edge, s, NEG_INF)                   # mask non-edges
        m = jnp.max(s, axis=1, keepdims=True)             # (TM, 1)
        p = jnp.exp(s - m)                                # non-edges underflow to 0 on edged rows
        denom = jnp.sum(p, axis=1, keepdims=True)
        zh = z[:, h * head_dim:(h + 1) * head_dim]        # (NS, D) bf16
        num = jnp.dot(p.astype(jnp.bfloat16), zh,
                      preferred_element_type=jnp.float32)  # (TM, D) f32
        has_edge = m > (0.5 * NEG_INF)                     # rows with >=1 in-edge for this etype
        outs.append(jnp.where(has_edge,
                              num * pl.reciprocal(denom, approx=True),
                              0.0))

    # One lane-dense (TM, H*D) accumulate; HeteroGraphConv aggregate='sum' over etypes
    # plus per-relation GATConv bias, accumulated in an f32 VMEM scratch.
    acc_ref[...] += jnp.concatenate(outs, axis=1) + b_ref[0]

    @pl.when(e_idx == last_e)
    def _():
        res = acc_ref[...]
        if apply_relu:
            res = jnp.maximum(res, 0.0)
        o_ref[...] = res.astype(o_ref.dtype)               # bf16 output (consumed by next layer)


def gat_hetero_layer(feat_bf16, adj_i8, w_bf16, wlt_bf16, wr_bf16, bias, *,
                     n_heads, head_dim, apply_relu, tm_proj, tm_attn):
    e_types, _, hd = w_bf16.shape
    n = feat_bf16.shape[0]

    z, el_t, er = project_all_relations(feat_bf16, w_bf16, wlt_bf16, wr_bf16, tm=tm_proj)

    kernel = functools.partial(attn_agg_kernel, n_heads=n_heads,
                               head_dim=head_dim, apply_relu=apply_relu)
    return pl.pallas_call(
        kernel,
        out_shape=jax.ShapeDtypeStruct((n, hd), jnp.bfloat16),
        grid=(n // tm_attn, e_types),
        in_specs=[
            pl.BlockSpec((1, tm_attn, n), lambda i, e: (e, i, 0)),        # adjacency tile (int8)
            pl.BlockSpec((e_types, n, hd), lambda i, e: (0, 0, 0)),       # z: resident, one DMA total
            pl.BlockSpec((e_types, n_heads, n), lambda i, e: (0, 0, 0)),  # el_t: resident
            pl.BlockSpec((1, tm_attn, n_heads), lambda i, e: (e, i, 0)),  # er tile (dst scores)
            pl.BlockSpec((1, 1, hd), lambda i, e: (e, 0, 0)),             # per-relation bias
        ],
        out_specs=pl.BlockSpec((tm_attn, hd), lambda i, e: (i, 0)),       # written once per row tile
        scratch_shapes=[pltpu.VMEM((tm_attn, hd), jnp.float32)],
        compiler_params=pltpu.CompilerParams(
            dimension_semantics=("parallel", "arbitrary"),
            vmem_limit_bytes=_VMEM_LIMIT),
    )(adj_i8, z, el_t, er, bias)


# ---------------------------------------------------------------------------
# Final fc: out = x @ W + b, tiled over node rows (large tiles; overhead-bound).
# ---------------------------------------------------------------------------
def linear_kernel(x_ref, w_ref, b_ref, o_ref):
    o_ref[...] = (jnp.dot(x_ref[...], w_ref[...], preferred_element_type=jnp.float32)
                  + b_ref[...])


def linear(x_bf16, w, b, *, tm):
    n, hid = x_bf16.shape
    out = w.shape[1]
    return pl.pallas_call(
        linear_kernel,
        out_shape=jax.ShapeDtypeStruct((n, out), jnp.float32),
        grid=(n // tm,),
        in_specs=[
            pl.BlockSpec((tm, hid), lambda i: (i, 0)),
            pl.BlockSpec((hid, out), lambda i: (0, 0)),
            pl.BlockSpec((1, out), lambda i: (0, 0)),
        ],
        out_specs=pl.BlockSpec((tm, out), lambda i: (i, 0)),
        compiler_params=pltpu.CompilerParams(
            dimension_semantics=("parallel",),
            vmem_limit_bytes=_VMEM_LIMIT),
    )(x_bf16, w.astype(jnp.bfloat16), b)


# ---------------------------------------------------------------------------
# Parameter init (deterministic, stacked per edge type), weight folding, forward.
# ---------------------------------------------------------------------------
def init_params(key, n_etypes, in_size, hid_size, out_size, n_layers, n_heads):
    head_dim = hid_size // n_heads
    layers = []
    for l in range(n_layers):
        fin = in_size if l == 0 else hid_size
        key, k1, k2, k3 = jax.random.split(key, 4)
        layers.append({
            "w": jax.random.normal(k1, (n_etypes, fin, hid_size), jnp.float32) / jnp.sqrt(float(fin)),
            "attn_l": jax.random.normal(k2, (n_etypes, n_heads, head_dim), jnp.float32) * 0.1,
            "attn_r": jax.random.normal(k3, (n_etypes, n_heads, head_dim), jnp.float32) * 0.1,
            "bias": jnp.zeros((n_etypes, 1, hid_size), jnp.float32),
        })
    key, kw = jax.random.split(key)
    return {
        "layers": layers,
        "fc_w": jax.random.normal(kw, (hid_size, out_size), jnp.float32) / jnp.sqrt(float(hid_size)),
        "fc_b": jnp.zeros((1, out_size), jnp.float32),
    }


def _fold_attn_weights(w, attn_l, attn_r, n_heads, head_dim):
    """Fold per-head attention vectors into the projection so that
    el = feat @ WL and er = feat @ WR (one MXU matmul each, no z dependency)."""
    e, f, hd = w.shape
    w4 = w.reshape(e, f, n_heads, head_dim)
    wl = jnp.einsum("efhd,ehd->efh", w4, attn_l)     # (E, F, H)
    wr = jnp.einsum("efhd,ehd->efh", w4, attn_r)     # (E, F, H)
    wlt = jnp.swapaxes(wl, 1, 2)                     # (E, H, F) for the A @ B^T score matmul
    return wlt.astype(jnp.bfloat16), wr.astype(jnp.bfloat16)


def rgat_forward(params, adj_i8, inputs, predict_category, *, n_heads):
    feat = inputs[predict_category]
    n = feat.shape[0]
    tm_big = _choose_tile(n, 512)    # projection / final linear (overhead-bound: large tiles)
    tm_attn = _choose_tile(n, 128)   # softmax+aggregation (O(H*TM*N_src) temporaries: keep 128)
    n_layers = len(params["layers"])

    h = feat.astype(jnp.bfloat16)    # bf16 activations throughout; f32 accumulation in-kernel
    for l, layer in enumerate(params["layers"]):
        head_dim = layer["attn_l"].shape[-1]
        w_bf16 = layer["w"].astype(jnp.bfloat16)
        wlt_bf16, wr_bf16 = _fold_attn_weights(layer["w"], layer["attn_l"], layer["attn_r"],
                                               n_heads, head_dim)
        h = gat_hetero_layer(h, adj_i8, w_bf16, wlt_bf16, wr_bf16, layer["bias"],
                             n_heads=n_heads, head_dim=head_dim,
                             apply_relu=(l != n_layers - 1),
                             tm_proj=tm_big, tm_attn=tm_attn)
        # TODO(synk): dropout == identity (eval mode).
    return linear(h, params["fc_w"], params["fc_b"], tm=tm_big)


if __name__ == "__main__":
    etypes = ["writes", "cites"]
    n_etypes = len(etypes)
    predict_category = "paper"
    N, in_size, hid_size, out_size = 256, 64, 128, 32
    n_layers, n_heads = 3, 4

    key = jax.random.PRNGKey(0)
    k_feat, k_adj, k_param = jax.random.split(key, 3)

    feat = jax.random.normal(k_feat, (N, in_size), jnp.float32)

    adj_list = []
    for ka in jax.random.split(k_adj, n_etypes):
        a = jax.random.uniform(ka, (N, N)) < 0.05
        a = jnp.logical_or(a, jnp.eye(N, dtype=bool))        # self-loops: in-degree >= 1 per etype
        adj_list.append(a.astype(jnp.int8))
    adj_i8 = jnp.stack(adj_list, axis=0)                      # (E, N_dst, N_src) 0/1 int8 mask

    params = init_params(k_param, n_etypes, in_size, hid_size, out_size, n_layers, n_heads)

    out = rgat_forward(params, adj_i8, {predict_category: feat}, predict_category,
                       n_heads=n_heads)
    out = jax.block_until_ready(out)
    assert out.shape == (N, out_size) and out.dtype == jnp.float32
    assert bool(jnp.all(jnp.isfinite(out)))
    print("KERNEL_OK")
</pallas_src>

<mosaic_0001>
module attributes {stable_mosaic.version = 11 : i64} {
  func.func @proj_kernel(%arg0: i32, %arg1: i32, %arg2: memref<256x64xbf16, #tpu.memory_space<vmem>>, %arg3: memref<1x64x128xbf16, #tpu.memory_space<vmem>>, %arg4: memref<1x4x64xbf16, #tpu.memory_space<vmem>>, %arg5: memref<1x64x4xbf16, #tpu.memory_space<vmem>>, %arg6: memref<1x256x128xbf16, #tpu.memory_space<vmem>>, %arg7: memref<1x4x256xf32, #tpu.memory_space<vmem>>, %arg8: memref<1x256x4xf32, #tpu.memory_space<vmem>>) attributes {dimension_semantics = [#tpu.dimension_semantics<parallel>, #tpu.dimension_semantics<parallel>], iteration_bounds = array<i64: 1, 2>, scalar_prefetch = 0 : i64, scratch_operands = 0 : i64, tpu.core_type = #tpu.core_type<tc>, window_params = [{transform_indices = @transform_0, window_bounds = array<i64: 256, 64>}, {transform_indices = @transform_1, window_bounds = array<i64: 1, 64, 128>}, {transform_indices = @transform_2, window_bounds = array<i64: 1, 4, 64>}, {transform_indices = @transform_3, window_bounds = array<i64: 1, 64, 4>}, {transform_indices = @transform_4, window_bounds = array<i64: 1, 256, 128>}, {transform_indices = @transform_5, window_bounds = array<i64: 1, 4, 256>}, {transform_indices = @transform_6, window_bounds = array<i64: 1, 256, 4>}]} {
    %c0 = arith.constant 0 : index
    %c0_0 = arith.constant 0 : index
    %0 = vector.load %arg2[%c0, %c0_0] : memref<256x64xbf16, #tpu.memory_space<vmem>>, vector<256x64xbf16>
    %c0_1 = arith.constant 0 : index
    %c0_2 = arith.constant 0 : index
    %c0_3 = arith.constant 0 : index
    %1 = vector.load %arg3[%c0_1, %c0_2, %c0_3] : memref<1x64x128xbf16, #tpu.memory_space<vmem>>, vector<1x64x128xbf16>
    %2 = vector.shape_cast %1 : vector<1x64x128xbf16> to vector<64x128xbf16>
    %cst = arith.constant dense<0.000000e+00> : vector<256x128xf32>
    %3 = tpu.matmul %0, %2, %cst {dimension_numbers = #tpu.dot_dimension_numbers<[1], [0], [0], [1], [0, 0, 1, 1], [], []>} : vector<256x64xbf16>, vector<64x128xbf16>, vector<256x128xf32> -> vector<256x128xf32>
    %c0_4 = arith.constant 0 : index
    %c0_5 = arith.constant 0 : index
    %c0_6 = arith.constant 0 : index
    %4 = vector.load %arg4[%c0_4, %c0_5, %c0_6] : memref<1x4x64xbf16, #tpu.memory_space<vmem>>, vector<1x4x64xbf16>
    %5 = vector.shape_cast %4 : vector<1x4x64xbf16> to vector<4x64xbf16>
    %cst_7 = arith.constant dense<0.000000e+00> : vector<4x256xf32>
    %6 = tpu.matmul %5, %0, %cst_7 {dimension_numbers = #tpu.dot_dimension_numbers<[1], [1], [0], [0], [0, 0, 1, 0], [], []>} : vector<4x64xbf16>, vector<256x64xbf16>, vector<4x256xf32> -> vector<4x256xf32>
    %c0_8 = arith.constant 0 : index
    %c0_9 = arith.constant 0 : index
    %c0_10 = arith.constant 0 : index
    %7 = vector.load %arg5[%c0_8, %c0_9, %c0_10] : memref<1x64x4xbf16, #tpu.memory_space<vmem>>, vector<1x64x4xbf16>
    %8 = vector.shape_cast %7 : vector<1x64x4xbf16> to vector<64x4xbf16>
    %cst_11 = arith.constant dense<0.000000e+00> : vector<256x4xf32>
    %9 = tpu.matmul %0, %8, %cst_11 {dimension_numbers = #tpu.dot_dimension_numbers<[1], [0], [0], [1], [0, 0, 1, 1], [], []>} : vector<256x64xbf16>, vector<64x4xbf16>, vector<256x4xf32> -> vector<256x4xf32>
    %10 = arith.truncf %3 : vector<256x128xf32> to vector<256x128xbf16>
    %c0_12 = arith.constant 0 : index
    %c0_13 = arith.constant 0 : index
    %c0_14 = arith.constant 0 : index
    %11 = vector.load %arg6[%c0_12, %c0_13, %c0_14] : memref<1x256x128xbf16, #tpu.memory_space<vmem>>, vector<1x256x128xbf16>
    %12 = vector.shape_cast %11 : vector<1x256x128xbf16> to vector<256x128xbf16>
    %13 = vector.shape_cast %10 : vector<256x128xbf16> to vector<1x256x128xbf16>
    tpu.vector_store %arg6[%c0_12, %c0_13, %c0_14], %13 {strides = array<i32>} : memref<1x256x128xbf16, #tpu.memory_space<vmem>>, vector<1x256x128xbf16>,
    %c0_15 = arith.constant 0 : index
    %c0_16 = arith.constant 0 : index
    %c0_17 = arith.constant 0 : index
    %14 = vector.load %arg7[%c0_15, %c0_16, %c0_17] : memref<1x4x256xf32, #tpu.memory_space<vmem>>, vector<1x4x256xf32>
    %15 = vector.shape_cast %14 : vector<1x4x256xf32> to vector<4x256xf32>
    %16 = vector.shape_cast %6 : vector<4x256xf32> to vector<1x4x256xf32>
    tpu.vector_store %arg7[%c0_15, %c0_16, %c0_17], %16 {strides = array<i32>} : memref<1x4x256xf32, #tpu.memory_space<vmem>>, vector<1x4x256xf32>,
    %c0_18 = arith.constant 0 : index
    %c0_19 = arith.constant 0 : index
    %c0_20 = arith.constant 0 : index
    %17 = vector.load %arg8[%c0_18, %c0_19, %c0_20] : memref<1x256x4xf32, #tpu.memory_space<vmem>>, vector<1x256x4xf32>
    %18 = vector.shape_cast %17 : vector<1x256x4xf32> to vector<256x4xf32>
    %19 = vector.shape_cast %9 : vector<256x4xf32> to vector<1x256x4xf32>
    tpu.vector_store %arg8[%c0_18, %c0_19, %c0_20], %19 {strides = array<i32>} : memref<1x256x4xf32, #tpu.memory_space<vmem>>, vector<1x256x4xf32>,
    return
  }
  func.func @transform_0(%arg0: i32, %arg1: i32) -> (i32, i32) {
    %c0_i32 = arith.constant 0 : i32
    %c0_i32_0 = arith.constant 0 : i32
    return %arg0, %c0_i32 : i32, i32
  }
  func.func @transform_1(%arg0: i32, %arg1: i32) -> (i32, i32, i32) {
    %c0_i32 = arith.constant 0 : i32
    %c0_i32_0 = arith.constant 0 : i32
    %c0_i32_1 = arith.constant 0 : i32
    return %arg1, %c0_i32, %c0_i32_0 : i32, i32, i32
  }
  func.func @transform_2(%arg0: i32, %arg1: i32) -> (i32, i32, i32) {
    %c0_i32 = arith.constant 0 : i32
    %c0_i32_0 = arith.constant 0 : i32
    %c0_i32_1 = arith.constant 0 : i32
    return %arg1, %c0_i32, %c0_i32_0 : i32, i32, i32
  }
  func.func @transform_3(%arg0: i32, %arg1: i32) -> (i32, i32, i32) {
    %c0_i32 = arith.constant 0 : i32
    %c0_i32_0 = arith.constant 0 : i32
    %c0_i32_1 = arith.constant 0 : i32
    return %arg1, %c0_i32, %c0_i32_0 : i32, i32, i32
  }
  func.func @transform_4(%arg0: i32, %arg1: i32) -> (i32, i32, i32) {
    %c0_i32 = arith.constant 0 : i32
    %c0_i32_0 = arith.constant 0 : i32
    return %arg1, %arg0, %c0_i32 : i32, i32, i32
  }
  func.func @transform_5(%arg0: i32, %arg1: i32) -> (i32, i32, i32) {
    %c0_i32 = arith.constant 0 : i32
    %c0_i32_0 = arith.constant 0 : i32
    return %arg1, %c0_i32, %arg0 : i32, i32, i32
  }
  func.func @transform_6(%arg0: i32, %arg1: i32) -> (i32, i32, i32) {
    %c0_i32 = arith.constant 0 : i32
    %c0_i32_0 = arith.constant 0 : i32
    return %arg1, %arg0, %c0_i32 : i32, i32, i32
  }
}

</mosaic_0001>

<bundles_post_ra>
// kernel: tpu_custom_call.1
= control target key start
LH: loop header
LB: loop body
LE: loop exit
PB: predicated region body
PF: predicated region fallthrough
CT: control target
= control target key end

     0   :  { %12 = vsyncpa [#allocation3], 0  ;;  %s2000_s0 = inlined_call_operand.vmem [shape: bf16[256,64], index: 0, kind: input, shape index: {}]   ;;  %s2001_s1 = inlined_call_operand.vmem [shape: bf16[2,64,128], index: 1, kind: input, shape index: {}]   ;;  %s2002_s2 = inlined_call_operand.vmem [shape: bf16[2,4,64], index: 2, kind: input, shape index: {}]   ;;  %s2003_s3 = inlined_call_operand.vmem [shape: bf16[2,64,4], index: 3, kind: input, shape index: {}]   ;;  %s2004_s4 = inlined_call_operand.hbm [shape: bf16[2,256,128], index: 4, kind: output, shape index: {0}]   ;;  %s2005_s5 = inlined_call_operand.hbm [shape: f32[2,4,256], index: 5, kind: output, shape index: {1}]   ;;  %s2006_s6 = inlined_call_operand.vmem [shape: f32[2,256,4], index: 6, kind: output, shape index: {2}]  }
   0x1   :  { %14 = vsyncpa [#allocation3 + $0x1], 0 }
   0x2   :  { %15 = vsyncpa [#allocation5], 0 }
   0x3   :  { %17 = vsyncpa [#allocation5 + $0x1], 0  ;;  %s1633_s21 = smov 0   ;;  %s1635_s22 = smov 0  }
   0x4   :  { %s1637_s23 = smov 0   ;;  %s1639_s24 = smov 0  }
   0x5   :  { %s1641_s25 = smov 0   ;;  %s1643_s26 = smov 0  }
   0x6 LB: > { %s1137_s27 = sadd.s32 4294967295, %s1594_s26   ;;  %s1138_s28 = sadd.s32 4294967294, %s1594_s26   ;;  %s1594_s26 = sphi %s1643_s26, %s23_s26   ;;  %s1590_s25 = sphi %s1641_s25, %s2013_s25   ;;  %s1586_s24 = sphi %s1639_s24, %s2012_s24   ;;  %s1582_s23 = sphi %s1637_s23, %s2011_s23   ;;  %s1578_s22 = sphi %s1635_s22, %s2010_s22   ;;  %s1574_s21 = sphi %s1633_s21, %s2009_s21  }
   0x7   : > { %s32_s29 = sadd.s32 1, %s1590_s25  ;;  %s148_s30 = sadd.s32 1, %s1582_s23 }
   0x8   : > { %p33_p0 = scmp.ge.s32.totalorder %s32_s29, 2  ;;  %p158_p1 = scmp.ne.s32.totalorder %s1582_s23, %s1578_s22 }
   0x9   : > { %p159_p2 = scmp.eq.s32.totalorder %s1137_s27, 1  ;;  %p164_p3 = scmp.ne.s32.totalorder %s1578_s22, %s1574_s21 }
   0xa   : > { %s2015_s29 = smov (%p33_p0, %s32_s29), 0  ;;  %p165_p5 = scmp.eq.s32.totalorder %s1138_s28, 1 }
   0xb   : > { %p1673_p4 = por %p159_p2, %p158_p1  ;;  %s143_s8 = ssub.s32 %s1590_s25, %s2015_s29 }
   0xc   : > { %p1142_p6 = scmp.ge.s32.totalorder %s1594_s26, 1  ;;  %p146_p7 = scmp.eq.s32.totalorder %s143_s8, 0 }
   0xd   : > { %p1680_p8 = por %p165_p5, %p164_p3  ;;  %p271_p9 = scmp.lt.s32.totalorder %s1594_s26, 3 }
   0xe   : > { %s1686_s10 = scalar_select %p146_p7, %s1582_s23, %s148_s30  }
   0xf   : > { %p272_p10 = pnand %p1142_p6, %p271_p9 }
  0x10   : > { %p335_p11 = scmp.lt.s32.totalorder (!%p272_p10), %s1586_s24, 1  ;;  %s1847_s17 = sand.u32 (!%p272_p10), 1, %s1578_s22  }
  0x11   : > { %275 = sbr.rel (%p272_p10) target bundleno = 328 (0x148), region = 36  ;;  %s1143_s27 = sshll.u32 (!%p272_p10), %s1847_s17, 7 }
  0x12   : > { %s1144_s30 = sshll.u32 (!%p272_p10), %s1847_s17, 3  ;;  %s905_s18 = scalar_lea.sflag (!%p272_p10), [#allocation5], %s1847_s17 }
  0x13   : > { %s1504_s8 = scalar_lea.hbm (!%p272_p10), %s2005_s5, 16 }
  0x16   : > { %v1691_v0 = vld [vmem:[%s2000_s0 + $0x78] sm:$0xff]  ;;  %vm506_vm0 = vcmask 523264   ;;  %s1697_s13 = scalar_select %p335_p11, %s1586_s24, 1  ;;  %v1703_v2 = vld [vmem:[%s2000_s0 + $0x70] sm:$0xff]  ;;  %v1721_v9 = vld [vmem:[%s2000_s0 + $0x68] sm:$0xff]  ;;  %vm866_vm1 = vcmask 31744  }
  0x17   : > { %v553_v1 = vsel %vm506_vm0, %v1691_v0, 0  ;;  %v550_v5 = vsel %vm506_vm0, %v1703_v2, 0  ;;  %v547_v11 = vsel %vm506_vm0, %v1721_v9, 0  ;;  %v1293_v14 = vld [vmem:[%s2000_s0] sm:$0xff]  ;;  %v1732_v15 = vld [vmem:[%s2000_s0 + $0x50] sm:$0xff]  ;;  %v1747_v18 = vld [vmem:[%s2000_s0 + $0x38] sm:$0xff] }
  0x18   : > { %661 = vmatpush.bf16.xpose.msra.mxu2 %v553_v1  ;;  %s1290_s14 = sshll.u32 %s1697_s13, 5  ;;  %v1737_v16 = vld [vmem:[%s2000_s0 + $0x30] sm:$0xff]  ;;  %v1742_v17 = vld [vmem:[%s2000_s0 + $0x60] sm:$0xff]  ;;  %v529_v20 = vsel %vm506_vm0, %v1747_v18, 0  ;;  %v1304_v21 = vld [vmem:[%s2000_s0 + $0x58] sm:$0xff]  ;;  %v538_v26 = vsel %vm506_vm0, %v1732_v15, 0 }
  0x19   : > { %s339_s19 = scalar_lea.vmem %s2001_s1, %s1290_s14  ;;  %s348_s28 = scalar_lea.vmem %s2003_s3, %s1290_s14  ;;  %v544_v19 = vsel %vm506_vm0, %v1742_v17, 0  ;;  %v526_v22 = vsel %vm506_vm0, %v1737_v16, 0  ;;  %v541_v23 = vsel %vm506_vm0, %v1304_v21, 0  ;;  %v1294_v24 = vld [vmem:[%s2000_s0 + $0x8] sm:$0xff]  ;;  %v1297_v28 = vld [vmem:[%s2000_s0 + $0x20] sm:$0xff]  ;;  %v1295_v32 = vld [vmem:[%s2000_s0 + $0x10] sm:$0xff] }
  0x1a   : > { %v1312_v3 = vld [vmem:[%s339_s19 + $0x18] sm:$0xff]  ;;  %v1311_v6 = vld [vmem:[%s339_s19 + $0x10] sm:$0xff]  ;;  %v1310_v8 = vld [vmem:[%s339_s19 + $0x8] sm:$0xff]  ;;  %v520_v30 = vsel %vm506_vm0, %v1297_v28, 0  ;;  %s1147_s11 = sshll.u32 %s1697_s13, 1  ;;  %v514_v37 = vsel %vm506_vm0, %v1295_v32, 0 }
  0x1b   : > { %v1711_v4 = vld [vmem:[%s348_s28 + $0x18] sm:$0xff]  ;;  %559 = vmatpush.bf16.msra.mxu0 %v1312_v3  ;;  %1414 = vmatpush.bf16.msra.mxu1 %v1312_v3  ;;  %v1716_v7 = vld [vmem:[%s348_s28 + $0x10] sm:$0xff]  ;;  %v1314_v10 = vld [vmem:[%s348_s28 + $0x8] sm:$0xff]  ;;  %s343_s15 = scalar_lea.vmem %s2002_s2, %s1147_s11  ;;  %v511_v39 = vsel %vm506_vm0, %v1294_v24, 0  ;;  %v508_v40 = vsel %vm506_vm0, %v1293_v14, 0  ;;  %s1292_s16 = sshll.u32 %s1697_s13, 8 }
  0x1c   : > { %1418 = vmatpush.bf16.msra.mxu3 %v1711_v4  ;;  %v1309_v12 = vld [vmem:[%s339_s19] sm:$0xff]  ;;  %v1770_v25 = vld [vmem:[%s2000_s0 + $0x28] sm:$0xff]  ;;  %v1296_v34 = vld [vmem:[%s2000_s0 + $0x18] sm:$0xff]  ;;  %s1855_s20 = scalar_lea.vmem %s2006_s6, %s1292_s16  ;;  %s1860_s13 = scalar_lea.vmem [#allocation2], %s1143_s27  ;;  %vm862_vm2 = vcmask 1043456  }
  0x1d   : > { %v1313_v13 = vld [vmem:[%s348_s28] sm:$0xff]  ;;  %v523_v27 = vsel %vm506_vm0, %v1770_v25, 0  ;;  %v1786_v29 = vld [vmem:[%s2000_s0 + $0x48] sm:$0xff]  ;;  %v517_v36 = vsel %vm506_vm0, %v1296_v34, 0  ;;  %s1318_s28 = sshll.u32 %s1586_s24, 3  ;;  %s317_s14 = scalar_lea.vmem [#allocation4], %s1144_s30 }
  0x1e   : > { %v535_v31 = vsel %vm506_vm0, %v1786_v29, 0  ;;  %v1301_v33 = vld [vmem:[%s2000_s0 + $0x40] sm:$0xff]  ;;  %s946_s12 = scalar_lea.hbm %s2005_s5, %s1318_s28 }
  0x1f   : > { %560 = vmatpush.bf16.msra.mxu0 %v1311_v6  ;;  %1415 = vmatpush.bf16.msra.mxu1 %v1311_v6  ;;  %v532_v35 = vsel %vm506_vm0, %v1301_v33, 0  ;;  %v644_v38 = vld [vmem:[%s343_s15] sm:$0x3]  ;;  %s948_s15 = sshll.u32 %s317_s14, 4  ;;  %s950_s16 = sshll.u32 %s946_s12, 4  ;;  %s949_s15 = int_to_ptr.vmem [resolvable:$true] %s948_s15  ;;  %s951_s16 = int_to_ptr.hbm [resolvable:$true] %s950_s16 }
  0x20   : > { %662 = vmatpush.bf16.xpose.msra.mxu2 %v550_v5  ;;  %1419 = vmatpush.bf16.msra.mxu3 %v1716_v7  ;;  %s1498_s19 = sshra.s32 %s951_s16, 4  ;;  %s1499_s19 = int_to_ptr.hbm [resolvable:$true] %s1498_s19 }
  0x21   : > { %s1500_s27 = scalar_lea.hbm %s1499_s19, 8  ;;  %p1505_p1 = scmp.lt.s32.totalorder %s1499_s19, %s2005_s5 }
  0x22   : > { %p1501_p12 = scmp.ne.s32.totalorder %s1499_s19, %s1500_s27  ;;  %p1506_p2 = scmp.lt.s32.totalorder %s1504_s8, %s1500_s27 }
  0x23   : > { %561 = vmatpush.bf16.msra.mxu0 %v1310_v8  ;;  %1416 = vmatpush.bf16.msra.mxu1 %v1310_v8 }
  0x24   : > { %1420 = vmatpush.bf16.msra.mxu3 %v1314_v10  ;;  %p1502_p13 = pnand %p1501_p12, %p1673_p4  ;;  %p1507_p3 = por %p1506_p2, %p1505_p1 }
  0x26   : > { %p1503_p0 = pneg %p1502_p13 }
  0x27   : > { %562 = vmatpush.bf16.msra.mxu0 %v1309_v12  ;;  %1417 = vmatpush.bf16.msra.mxu1 %v1309_v12 }
  0x28   : > { %663 = vmatpush.bf16.xpose.msra.mxu2 %v547_v11  ;;  %1421 = vmatpush.bf16.msra.mxu3 %v1313_v13  ;;  %p1508_p5 = pnand %p1507_p3, %p1503_p0 }
  0x2a   : > { %1232 = vmatmul.msk.bf16.vlgmr.msra.gmra.mxu0 %vm506_vm0, %v1293_v14  ;;  %1242 = vmatmul.msk.bf16.vlgmr.msra.gmra.mxu1 %vm506_vm0, %v1732_v15 }
  0x2b   : > { %1272 = vmatmul.msk.bf16.vlgmr.msra.gmra.mxu3 %vm506_vm0, %v1737_v16  ;;  %648 = vmatpush.bf16.xpose.msrb.mxu1 %v529_v20 }
  0x30   : > { %664 = vmatpush.bf16.xpose.msra.mxu2 %v544_v19 }
  0x33   : > { %649 = vmatpush.bf16.xpose.msrb.mxu1 %v526_v22 }
  0x38   : > { %665 = vmatpush.bf16.xpose.msra.mxu2 %v541_v23 }
  0x3a   : > { %1233 = vmatmul.msk.bf16.gmra.mxu0 %vm506_vm0, %v1294_v24  ;;  %1243 = vmatmul.msk.bf16.gmra.mxu1 %vm506_vm0, %v1304_v21 }
  0x3b   : > { %1273 = vmatmul.msk.bf16.gmra.mxu3 %vm506_vm0, %v1747_v18  ;;  %650 = vmatpush.bf16.xpose.msrb.mxu1 %v523_v27 }
  0x40   : > { %666 = vmatpush.bf16.xpose.msra.mxu2 %v538_v26 }
  0x43   : > { %651 = vmatpush.bf16.xpose.msrb.mxu1 %v520_v30 }
  0x48   : > { %667 = vmatpush.bf16.xpose.msra.mxu2 %v535_v31 }
  0x4a   : > { %1234 = vmatmul.msk.bf16.gmra.mxu0 %vm506_vm0, %v1295_v32  ;;  %1244 = vmatmul.msk.bf16.gmra.mxu1 %vm506_vm0, %v1742_v17 }
  0x4b   : > { %1274 = vmatmul.msk.bf16.gmra.mxu3 %vm506_vm0, %v1301_v33  ;;  %652 = vmatpush.bf16.xpose.msrb.mxu1 %v517_v36 }
  0x50   : > { %668 = vmatpush.bf16.xpose.msra.mxu2 %v532_v35 }
  0x53   : > { %653 = vmatpush.bf16.xpose.msrb.mxu1 %v514_v37 }
  0x57   : > { %1249 = vmatmul.msk.bf16.vlgmr.msra.gmra.mxu2 %vm506_vm0, %v644_v38 }
  0x58   : > { %710 = vmatpush.bf16.msrb.mxu2 %v1711_v4 }
  0x5a   : > { %1235 = vmatmul.msk.bf16.gmra.mxu0 %vm506_vm0, %v1296_v34  ;;  %1245 = vmatmul.msk.bf16.gmra.mxu1 %vm506_vm0, %v1721_v9 }
  0x5b   : > { %1275 = vmatmul.msk.bf16.gmra.mxu3 %vm506_vm0, %v1786_v29  ;;  %654 = vmatpush.bf16.xpose.msrb.mxu1 %v511_v39 }
  0x5c   : > { %711 = vmatpush.bf16.msrb.mxu2 %v1716_v7 }
  0x60   : > { %712 = vmatpush.bf16.msrb.mxu2 %v1314_v10 }
  0x63   : > { %655 = vmatpush.bf16.xpose.msrb.mxu1 %v508_v40 }
  0x64   : > { %713 = vmatpush.bf16.msrb.mxu2 %v1313_v13 }
  0x67   : > { %1266 = vmatmul.msk.bf16.vlgmr.msrb.gmra.mxu2 %vm506_vm0, %v1293_v14 }
  0x6a   : > { %1236 = vmatmul.msk.bf16.gmra.mxu0 %vm506_vm0, %v1297_v28  ;;  %1246 = vmatmul.msk.bf16.gmra.mxu1 %vm506_vm0, %v1703_v2 }
  0x6b   : > { %1276 = vmatmul.msk.bf16.gmra.mxu3 %vm506_vm0, %v1732_v15 }
  0x77   : > { %1267 = vmatmul.msk.bf16.gmra.mxu2 %vm506_vm0, %v1294_v24 }
  0x7a   : > { %1237 = vmatmul.msk.bf16.gmra.mxu0 %vm506_vm0, %v1770_v25  ;;  %1247 = vmatmul.msk.bf16.gmra.mxu1 %vm506_vm0, %v1691_v0 }
  0x7b   : > { %1277 = vmatmul.msk.bf16.gmra.mxu3 %vm506_vm0, %v1304_v21 }
  0x87   : > { %1268 = vmatmul.msk.bf16.gmra.mxu2 %vm506_vm0, %v1295_v32 }
  0x8a   : > { %1238 = vmatmul.msk.bf16.gmra.mxu0 %vm506_vm0, %v1737_v16  ;;  %1248 = vmatmul.msk.bf16.vlgmr.msrb.gmra.mxu1 %vm506_vm0, %v644_v38 }
  0x8b   : > { %1278 = vmatmul.msk.bf16.gmra.mxu3 %vm506_vm0, %v1742_v17 }
  0x97   : > { %1269 = vmatmul.msk.bf16.gmra.mxu2 %vm506_vm0, %v1296_v34 }
  0x9a   : > { %1239 = vmatmul.msk.bf16.gmra.mxu0 %vm506_vm0, %v1747_v18 }
  0x9b   : > { %1279 = vmatmul.msk.bf16.gmra.mxu3 %vm506_vm0, %v1721_v9 }
  0xa7   : > { %1270 = vmatmul.msk.bf16.gmra.mxu2 %vm506_vm0, %v1297_v28  ;;  %v564_v41 = vpop.f32.mrf.mxu0  ;;  %v614_v42 = vpop.f32.mrf.mxu1 }
  0xaa   : > { %1240 = vmatmul.msk.bf16.gmra.mxu0 %vm506_vm0, %v1301_v33 }
  0xab   : > { %1280 = vmatmul.msk.bf16.gmra.mxu3 %vm506_vm0, %v1703_v2 }
  0xae   : > { %v745_v43 = vpop.f32.mrf.mxu3 }
  0xaf   : > { %879 = vst.msk [vmem:[%s1855_s20 + $0x60] sm:$0xff] %vm866_vm1, %v745_v43  ;;  %v566_v44 = vpop.f32.mrf.mxu0  ;;  %v616_v45 = vpop.f32.mrf.mxu1 }
  0xb0   : > { %v1322_v46 = vpack.c.bf16 %v566_v44, %v564_v41  ;;  %v1372_v47 = vpack.c.bf16 %v616_v45, %v614_v42 }
  0xb2   : > { %1323 = vst [vmem:[%s1860_s13] sm:$0xff] %v1322_v46  }
  0xb3   : > { %1408 = vst [vmem:[%s1860_s13 + $0x50] sm:$0xff] %v1372_v47  }
  0xb6   : > { %v747_v48 = vpop.f32.mrf.mxu3 }
  0xb7   : > { %1271 = vmatmul.msk.bf16.gmra.mxu2 %vm506_vm0, %v1770_v25  ;;  %880 = vst.msk [vmem:[%s1855_s20 + $0x68] sm:$0xff] %vm866_vm1, %v747_v48  ;;  %v569_v49 = vpop.f32.mrf.mxu0  ;;  %v619_v50 = vpop.f32.mrf.mxu1 }
  0xba   : > { %1241 = vmatmul.msk.bf16.gmra.mxu0 %vm506_vm0, %v1786_v29 }
  0xbb   : > { %1281 = vmatmul.msk.bf16.gmra.mxu3 %vm506_vm0, %v1691_v0 }
  0xbe   : > { %v750_v51 = vpop.f32.mrf.mxu3 }
  0xbf   : > { %881 = vst.msk [vmem:[%s1855_s20 + $0x70] sm:$0xff] %vm866_vm1, %v750_v51  ;;  %v571_v52 = vpop.f32.mrf.mxu0  ;;  %v621_v53 = vpop.f32.mrf.mxu1 }
  0xc0   : > { %v1327_v54 = vpack.c.bf16 %v571_v52, %v569_v49  ;;  %v1377_v55 = vpack.c.bf16 %v621_v53, %v619_v50 }
  0xc2   : > { %1399 = vst [vmem:[%s1860_s13 + $0x8] sm:$0xff] %v1327_v54  }
  0xc3   : > { %1409 = vst [vmem:[%s1860_s13 + $0x58] sm:$0xff] %v1377_v55  }
  0xc6   : > { %v752_v56 = vpop.f32.mrf.mxu3 }
  0xc7   : > { %882 = vst.msk [vmem:[%s1855_s20 + $0x78] sm:$0xff] %vm866_vm1, %v752_v56  ;;  %v574_v57 = vpop.f32.mrf.mxu0  ;;  %v624_v58 = vpop.f32.mrf.mxu1 }
  0xce   : > { %v755_v59 = vpop.f32.mrf.mxu3 }
  0xcf   : > { %883 = vst.msk [vmem:[%s1855_s20 + $0x80] sm:$0xff] %vm866_vm1, %v755_v59  ;;  %v576_v60 = vpop.f32.mrf.mxu0  ;;  %v626_v61 = vpop.f32.mrf.mxu1 }
  0xd0   : > { %v1332_v62 = vpack.c.bf16 %v576_v60, %v574_v57  ;;  %v1382_v63 = vpack.c.bf16 %v626_v61, %v624_v58 }
  0xd2   : > { %1400 = vst [vmem:[%s1860_s13 + $0x10] sm:$0xff] %v1332_v62  }
  0xd3   : > { %1410 = vst [vmem:[%s1860_s13 + $0x60] sm:$0xff] %v1382_v63  }
  0xd6   : > { %v757_v0 = vpop.f32.mrf.mxu3 }
  0xd7   : > { %884 = vst.msk [vmem:[%s1855_s20 + $0x88] sm:$0xff] %vm866_vm1, %v757_v0  ;;  %v579_v1 = vpop.f32.mrf.mxu0  ;;  %v629_v2 = vpop.f32.mrf.mxu1 }
  0xda   : > { %v670_v3 = vpop.f32.mrf.mxu2 }
  0xdb   : > { %v861_v30 = vrot.slane %v670_v3, 4 }
  0xde   : > { %v760_v4 = vpop.f32.mrf.mxu3 }
  0xdf   : > { %885 = vst.msk [vmem:[%s1855_s20 + $0x90] sm:$0xff] %vm866_vm1, %v760_v4  ;;  %v581_v5 = vpop.f32.mrf.mxu0  ;;  %v631_v6 = vpop.f32.mrf.mxu1 }
  0xe0   : > { %v1337_v7 = vpack.c.bf16 %v581_v5, %v579_v1  ;;  %v1387_v8 = vpack.c.bf16 %v631_v6, %v629_v2 }
  0xe2   : > { %v672_v9 = vpop.f32.mrf.mxu2  ;;  %1401 = vst [vmem:[%s1860_s13 + $0x18] sm:$0xff] %v1337_v7  }
  0xe3   : > { %1411 = vst [vmem:[%s1860_s13 + $0x68] sm:$0xff] %v1387_v8  }
  0xe6   : > { %v762_v10 = vpop.f32.mrf.mxu3 }
  0xe7   : > { %886 = vst.msk [vmem:[%s1855_s20 + $0x98] sm:$0xff] %vm866_vm1, %v762_v10  ;;  %v584_v11 = vpop.f32.mrf.mxu0  ;;  %v634_v12 = vpop.f32.mrf.mxu1 }
  0xea   : > { %v715_v13 = vpop.f32.mrf.mxu2 }
  0xeb   : > { %867 = vst.msk [vmem:[%s1855_s20] sm:$0xff] %vm866_vm1, %v715_v13 }
  0xee   : > { %v765_v14 = vpop.f32.mrf.mxu3 }
  0xef   : > { %887 = vst.msk [vmem:[%s1855_s20 + $0xa0] sm:$0xff] %vm866_vm1, %v765_v14  ;;  %v586_v15 = vpop.f32.mrf.mxu0  ;;  %v636_v16 = vpop.f32.mrf.mxu1 }
  0xf0   : > { %v1342_v17 = vpack.c.bf16 %v586_v15, %v584_v11  ;;  %v1392_v18 = vpack.c.bf16 %v636_v16, %v634_v12 }
  0xf2   : > { %v717_v19 = vpop.f32.mrf.mxu2  ;;  %1402 = vst [vmem:[%s1860_s13 + $0x20] sm:$0xff] %v1342_v17  }
  0xf3   : > { %868 = vst.msk [vmem:[%s1855_s20 + $0x8] sm:$0xff] %vm866_vm1, %v717_v19 }
  0xf4   : > { %1412 = vst [vmem:[%s1860_s13 + $0x70] sm:$0xff] %v1392_v18  }
  0xf6   : > { %v767_v20 = vpop.f32.mrf.mxu3 }
  0xf7   : > { %888 = vst.msk [vmem:[%s1855_s20 + $0xa8] sm:$0xff] %vm866_vm1, %v767_v20  ;;  %v589_v21 = vpop.f32.mrf.mxu0  ;;  %v639_v22 = vpop.f32.mrf.mxu1 }
  0xfa   : > { %v720_v23 = vpop.f32.mrf.mxu2 }
  0xfb   : > { %869 = vst.msk [vmem:[%s1855_s20 + $0x10] sm:$0xff] %vm866_vm1, %v720_v23 }
  0xfe   : > { %v770_v24 = vpop.f32.mrf.mxu3 }
  0xff   : > { %889 = vst.msk [vmem:[%s1855_s20 + $0xb0] sm:$0xff] %vm866_vm1, %v770_v24  ;;  %v591_v25 = vpop.f32.mrf.mxu0  ;;  %v641_v26 = vpop.f32.mrf.mxu1 }
 0x100   : > { %v1347_v27 = vpack.c.bf16 %v591_v25, %v589_v21  ;;  %v1397_v28 = vpack.c.bf16 %v641_v26, %v639_v22 }
 0x102   : > { %v722_v29 = vpop.f32.mrf.mxu2  ;;  %1403 = vst [vmem:[%s1860_s13 + $0x28] sm:$0xff] %v1347_v27  }
 0x103   : > { %870 = vst.msk [vmem:[%s1855_s20 + $0x18] sm:$0xff] %vm866_vm1, %v722_v29 }
 0x104   : > { %1413 = vst [vmem:[%s1860_s13 + $0x78] sm:$0xff] %v1397_v28  }
 0x106   : > { %v772_v31 = vpop.f32.mrf.mxu3 }
 0x107   : > { %890 = vst.msk [vmem:[%s1855_s20 + $0xb8] sm:$0xff] %vm866_vm1, %v772_v31  ;;  %v594_v32 = vpop.f32.mrf.mxu0  ;;  %v657_v33 = vpop.f32.mrf.mxu1 }
 0x108   : > { %v863_v34 = vsel %vm862_vm2, %v657_v33, %v861_v30 }
 0x109   : > { %865 = vst [vmem:[%s317_s14] sm:$0xff] %v863_v34 }
 0x10a   : > { %v725_v35 = vpop.f32.mrf.mxu2 }
 0x10b   : > { %871 = vst.msk [vmem:[%s1855_s20 + $0x20] sm:$0xff] %vm866_vm1, %v725_v35 }
 0x10c   : > { %1511 = shalt.err (!%p1508_p5)
}
 0x10d   : > { %1423 = dma.vmem_to_hbm [thread:$0]  (%p1673_p4), %s949_s15, 128, %s951_s16, %s905_s18  }
 0x10e   : > { %v775_v36 = vpop.f32.mrf.mxu3  ;;  %s1317_s14 = sshll.u32 %s1586_s24, 7  ;;  %s928_s19 = sshll.u32 %s1860_s13, 4  ;;  %s929_s19 = int_to_ptr.vmem [resolvable:$true] %s928_s19 }
 0x10f   : > { %891 = vst.msk [vmem:[%s1855_s20 + $0xc0] sm:$0xff] %vm866_vm1, %v775_v36  ;;  %v596_v37 = vpop.f32.mrf.mxu0  ;;  %v659_v38 = vpop.f32.mrf.mxu1  ;;  %s927_s18 = scalar_lea.hbm %s2004_s4, %s1317_s14  ;;  %s900_s24 = scalar_lea.sflag [#allocation3], %s1847_s17 }
 0x110   : > { %v1352_v39 = vpack.c.bf16 %v596_v37, %v594_v32  ;;  %s930_s27 = sshll.u32 %s927_s18, 4  ;;  %s1532_s12 = scalar_lea.hbm %s2004_s4, 256  ;;  %s931_s27 = int_to_ptr.hbm [resolvable:$true] %s930_s27 }
 0x111   : > { %s1526_s28 = sshra.s32 %s931_s27, 4  ;;  %s1527_s28 = int_to_ptr.hbm [resolvable:$true] %s1526_s28 }
 0x112   : > { %v727_v40 = vpop.f32.mrf.mxu2  ;;  %1404 = vst [vmem:[%s1860_s13 + $0x30] sm:$0xff] %v1352_v39   ;;  %s1528_s30 = scalar_lea.hbm %s1527_s28, 128  ;;  %p1533_p10 = scmp.lt.s32.totalorder %s1527_s28, %s2004_s4 }
 0x113   : > { %872 = vst.msk [vmem:[%s1855_s20 + $0x28] sm:$0xff] %vm866_vm1, %v727_v40  ;;  %p1529_p6 = scmp.ne.s32.totalorder %s1527_s28, %s1528_s30  ;;  %p1534_p11 = scmp.lt.s32.totalorder %s1532_s12, %s1528_s30 }
 0x115   : > { %p1530_p7 = pnand %p1529_p6, %p1673_p4  ;;  %p1535_p12 = por %p1534_p11, %p1533_p10 }
 0x116   : > { %v777_v41 = vpop.f32.mrf.mxu3 }
 0x117   : > { %892 = vst.msk [vmem:[%s1855_s20 + $0xc8] sm:$0xff] %vm866_vm1, %v777_v41  ;;  %v599_v42 = vpop.f32.mrf.mxu0  ;;  %p1531_p9 = pneg %p1530_p7 }
 0x119   : > { %p1536_p13 = pnand %p1535_p12, %p1531_p9 }
 0x11a   : > { %v730_v43 = vpop.f32.mrf.mxu2 }
 0x11b   : > { %873 = vst.msk [vmem:[%s1855_s20 + $0x30] sm:$0xff] %vm866_vm1, %v730_v43 }
 0x11e   : > { %v780_v44 = vpop.f32.mrf.mxu3 }
 0x11f   : > { %893 = vst.msk [vmem:[%s1855_s20 + $0xd0] sm:$0xff] %vm866_vm1, %v780_v44  ;;  %v601_v45 = vpop.f32.mrf.mxu0 }
 0x120   : > { %v1357_v46 = vpack.c.bf16 %v601_v45, %v599_v42 }
 0x122   : > { %v732_v47 = vpop.f32.mrf.mxu2  ;;  %1405 = vst [vmem:[%s1860_s13 + $0x38] sm:$0xff] %v1357_v46  }
 0x123   : > { %874 = vst.msk [vmem:[%s1855_s20 + $0x38] sm:$0xff] %vm866_vm1, %v732_v47 }
 0x126   : > { %v782_v48 = vpop.f32.mrf.mxu3 }
 0x127   : > { %894 = vst.msk [vmem:[%s1855_s20 + $0xd8] sm:$0xff] %vm866_vm1, %v782_v48  ;;  %v604_v49 = vpop.f32.mrf.mxu0 }
 0x12a   : > { %v735_v50 = vpop.f32.mrf.mxu2 }
 0x12b   : > { %875 = vst.msk [vmem:[%s1855_s20 + $0x40] sm:$0xff] %vm866_vm1, %v735_v50 }
 0x12e   : > { %v785_v51 = vpop.f32.mrf.mxu3 }
 0x12f   : > { %895 = vst.msk [vmem:[%s1855_s20 + $0xe0] sm:$0xff] %vm866_vm1, %v785_v51  ;;  %v606_v52 = vpop.f32.mrf.mxu0 }
 0x130   : > { %v1362_v53 = vpack.c.bf16 %v606_v52, %v604_v49 }
 0x132   : > { %v737_v54 = vpop.f32.mrf.mxu2  ;;  %1406 = vst [vmem:[%s1860_s13 + $0x40] sm:$0xff] %v1362_v53  }
 0x133   : > { %876 = vst.msk [vmem:[%s1855_s20 + $0x48] sm:$0xff] %vm866_vm1, %v737_v54 }
 0x136   : > { %v787_v55 = vpop.f32.mrf.mxu3 }
 0x137   : > { %896 = vst.msk [vmem:[%s1855_s20 + $0xe8] sm:$0xff] %vm866_vm1, %v787_v55  ;;  %v609_v56 = vpop.f32.mrf.mxu0 }
 0x13a   : > { %v740_v57 = vpop.f32.mrf.mxu2 }
 0x13b   : > { %877 = vst.msk [vmem:[%s1855_s20 + $0x50] sm:$0xff] %vm866_vm1, %v740_v57 }
 0x13e   : > { %v790_v58 = vpop.f32.mrf.mxu3 }
 0x13f   : > { %897 = vst.msk [vmem:[%s1855_s20 + $0xf0] sm:$0xff] %vm866_vm1, %v790_v58  ;;  %v611_v59 = vpop.f32.mrf.mxu0 }
 0x140   : > { %v1367_v60 = vpack.c.bf16 %v611_v59, %v609_v56 }
 0x142   : > { %v742_v61 = vpop.f32.mrf.mxu2  ;;  %1407 = vst [vmem:[%s1860_s13 + $0x48] sm:$0xff] %v1367_v60  }
 0x143   : > { %878 = vst.msk [vmem:[%s1855_s20 + $0x58] sm:$0xff] %vm866_vm1, %v742_v61 }
 0x144   : > { %1539 = shalt.err (!%p1536_p13)
}
 0x145   : > { %s1596_s17 = smov 64   ;;  %s1597_s13 = smov 4  }
 0x146   : > { %1422 = dma.vmem_to_hbm [thread:$0]  (%p1673_p4), %s929_s19, 2048, %s931_s27, %s900_s24, %s1596_s17, %s1596_s17, %s1597_s13   ;;  %v792_v62 = vpop.f32.mrf.mxu3 }
 0x147   : > { %898 = vst.msk [vmem:[%s1855_s20 + $0xf8] sm:$0xff] %vm866_vm1, %v792_v62 }
 0x148 PF: > { %p1433_p0 = scmp.ge.s32.totalorder %s1594_s26, 2  ;;  %s966_s16 = sand.u32 1, %s1574_s21  }
 0x149   : > { %s967_s18 = scalar_lea.sflag [#allocation3], %s966_s16 }
 0x14a   : > { %p1427_p1 = pnand %p1433_p0, %p1680_p8 }
 0x14c   : > { %p1428_p2 = pneg %p1427_p1 }
 0x14e   : > { %1565 = dma.done.wait (%p1428_p2), %s967_s18, 2048  }
 0x14f   : > { %1567 = vsyncadd (%p1428_p2), %s967_s18, 4294965248  ;;  %s977_s28 = scalar_lea.sflag [#allocation5], %s966_s16 }
 0x150   : > { %1569 = dma.done.wait (%p1428_p2), %s977_s28, 128  }
 0x151   : > { %1571 = vsyncadd (%p1428_p2), %s977_s28, 4294967168  ;;  %s23_s26 = sadd.s32 1, %s1594_s26   ;;  %s2009_s21 = smov %s1578_s22 }
 0x152   : > { %p20_p4 = scmp.ge.s32.totalorder %s23_s26, 4   ;;  %s2010_s22 = smov %s1582_s23 }
 0x153   : > { %s2011_s23 = smov %s1686_s10  ;;  %s2012_s24 = smov %s1590_s25 }
 0x154   : > { %s2013_s25 = smov %s2015_s29  ;;  %22 = sbr.rel (!%p20_p4) target bundleno = 6 (0x6), region = 109 }
 0x159   :  { %995 = vsyncpa [#allocation3], 1 }
 0x15a   :  { %997 = vsyncpa [#allocation3 + $0x1], 1 }
 0x15b   :  { %998 = vsyncpa [#allocation5], 1 }
 0x15c   :  { %1000 = vsyncpa [#allocation5 + $0x1], 1 }

</bundles_post_ra>
